<compile_context>
chip_gen: v6e
topology: v6e:2x2x1
jax: 0.10.0
libtpu: 0.0.40
codegen_flags: <defaults>
</compile_context>

<pallas_src>
import functools

import jax
import jax.numpy as jnp
from jax import lax
from jax.experimental import pallas as pl
from jax.experimental.pallas import tpu as pltpu

_LOG_2PI = 1.8378770664093453  # log(2*pi)


def _npe_loss_kernel(theta_ref, x_ref, w1_ref, b1_ref, wh_ref, bh_ref,
                     out_ref, acc_ref, *, n_true, tile_n, d):
    pid = pl.program_id(0)

    @pl.when(pid == 0)
    def _():
        acc_ref[...] = jnp.zeros_like(acc_ref)

    theta = theta_ref[...].astype(jnp.float32)   # (TN, D)
    x = x_ref[...].astype(jnp.float32)           # (TN, L)

    # Hidden layer: one MXU matmul + VPU tanh.  Bias broadcast loaded once.
    h = jnp.tanh(
        jnp.dot(x, w1_ref[...], preferred_element_type=jnp.float32) + b1_ref[...]
    )                                            # (TN, H)

    # Fused Gaussian head: single MXU matmul producing [mu | log_sigma].
    head = jnp.dot(h, wh_ref[...], preferred_element_type=jnp.float32) + bh_ref[...]
    mu = head[:, :d]                             # (TN, D)
    log_sigma = head[:, d:]                      # (TN, D)

    # Diagonal-Gaussian log-density terms; the -0.5*log(2*pi) per-element
    # constant is hoisted out and applied once in the finalize step.
    z = (theta - mu) * jnp.exp(-log_sigma)
    terms = -log_sigma - 0.5 * (z * z)           # (TN, D)

    # Mask rows of the zero-padded last tile (global row index >= true N).
    rows = pid * tile_n + lax.broadcasted_iota(jnp.int32, (tile_n, 1), 0)
    terms = jnp.where(rows < n_true, terms, 0.0)

    # Single fused reduction into the scalar accumulator.
    acc_ref[...] += jnp.sum(terms, axis=(0, 1), keepdims=True)   # (1, 1)

    @pl.when(pid == pl.num_programs(0) - 1)
    def _():
        inv_n = jnp.float32(1.0 / n_true)
        # loss = -(1/N) * [acc + N*D*(-0.5*log(2*pi))] = -acc/N + 0.5*log(2*pi)*D
        out_ref[...] = -(acc_ref[...] * inv_n) + jnp.float32(0.5 * _LOG_2PI * d)


def npe_loss(theta, x, params, *, tile_n=None):
    """NPELoss with the synthetic Gaussian NPE estimator, batch-tiled Pallas."""
    w1, b1, wmu, bmu, wls, bls = params
    n, d = theta.shape
    _, l = x.shape
    hdim = w1.shape[1]

    # Fuse the two head projections into one (H, 2D) matmul.
    w_head = jnp.concatenate([wmu, wls], axis=1)   # (H, 2D)
    b_head = jnp.concatenate([bmu, bls], axis=1)   # (1, 2D)

    if tile_n is None:
        # Large batch tiles hide the HBM->VMEM DMA; keep a multiple of 8
        # (sublane) and conservative enough for v7x's 64 MiB VMEM with
        # double-buffered theta/x input blocks.
        tile_n = min(1024, max(8, pl.cdiv(n, 8) * 8))
    tile_n = max(8, (tile_n // 8) * 8)

    n_pad = pl.cdiv(n, tile_n) * tile_n
    if n_pad != n:
        theta = jnp.pad(theta, ((0, n_pad - n), (0, 0)))
        x = jnp.pad(x, ((0, n_pad - n), (0, 0)))
    num_blocks = n_pad // tile_n

    kernel = functools.partial(_npe_loss_kernel, n_true=n, tile_n=tile_n, d=d)

    out = pl.pallas_call(
        kernel,
        out_shape=jax.ShapeDtypeStruct((1, 1), jnp.float32),
        grid=(num_blocks,),
        in_specs=[
            pl.BlockSpec((tile_n, d), lambda i: (i, 0)),    # theta (tiled)
            pl.BlockSpec((tile_n, l), lambda i: (i, 0)),    # x     (tiled)
            pl.BlockSpec((l, hdim), lambda i: (0, 0)),      # W1     (resident)
            pl.BlockSpec((1, hdim), lambda i: (0, 0)),      # b1     (resident)
            pl.BlockSpec((hdim, 2 * d), lambda i: (0, 0)),  # W_head (resident)
            pl.BlockSpec((1, 2 * d), lambda i: (0, 0)),     # b_head (resident)
        ],
        out_specs=pl.BlockSpec((1, 1), lambda i: (0, 0)),
        scratch_shapes=[pltpu.VMEM((1, 1), jnp.float32)],
        compiler_params=pltpu.CompilerParams(
            dimension_semantics=("arbitrary",)),
    )(theta, x, w1, b1, w_head, b_head)
    return out[0, 0]


def _reference(theta, x, params):
    w1, b1, wmu, bmu, wls, bls = params
    h = jnp.tanh(x @ w1 + b1)
    mu = h @ wmu + bmu
    log_sigma = h @ wls + bls
    z = (theta - mu) * jnp.exp(-log_sigma)
    terms = -0.5 * jnp.log(2 * jnp.pi) - log_sigma - 0.5 * z * z
    log_p = jnp.sum(terms, axis=-1)
    return -jnp.mean(log_p)


if __name__ == "__main__":
    # Small shapes: N=40 pairs (non-multiple of the tile, exercises masking),
    # theta dim D=4, observation dim L=16, hidden H=32, batch tile TN=16.
    N, D, L, H = 40, 4, 16, 32

    key = jax.random.PRNGKey(0)
    k_theta, k_x, k1, k2, k3, k4, k5 = jax.random.split(key, 7)

    theta = jax.random.normal(k_theta, (N, D), dtype=jnp.float32)
    x = jax.random.normal(k_x, (N, L), dtype=jnp.float32)

    # Deterministic parameter init (Glorot-ish scaling, nonzero biases).
    w1 = jax.random.normal(k1, (L, H), dtype=jnp.float32) * (1.0 / jnp.sqrt(L))
    b1 = jax.random.normal(k4, (1, H), dtype=jnp.float32) * 0.1
    wmu = jax.random.normal(k2, (H, D), dtype=jnp.float32) * (1.0 / jnp.sqrt(H))
    bmu = jax.random.normal(k5, (1, D), dtype=jnp.float32) * 0.1
    wls = jax.random.normal(k3, (H, D), dtype=jnp.float32) * (0.1 / jnp.sqrt(H))
    bls = jnp.zeros((1, D), dtype=jnp.float32)
    params = (w1, b1, wmu, bmu, wls, bls)

    loss = npe_loss(theta, x, params, tile_n=16)
    jax.block_until_ready(loss)

    ref = _reference(theta, x, params)
    assert jnp.allclose(loss, ref, rtol=1e-5, atol=1e-5), (loss, ref)

    print("KERNEL_OK")
</pallas_src>

<mosaic_0001>
module attributes {stable_mosaic.version = 11 : i64} {
  func.func @_npe_loss_kernel(%arg0: i32, %arg1: memref<16x4xf32, #tpu.memory_space<vmem>>, %arg2: memref<16x16xf32, #tpu.memory_space<vmem>>, %arg3: memref<16x32xf32, #tpu.memory_space<vmem>>, %arg4: memref<1x32xf32, #tpu.memory_space<vmem>>, %arg5: memref<32x8xf32, #tpu.memory_space<vmem>>, %arg6: memref<1x8xf32, #tpu.memory_space<vmem>>, %arg7: memref<1x1xf32, #tpu.memory_space<vmem>>, %arg8: memref<1x1xf32, #tpu.memory_space<vmem>>) attributes {dimension_semantics = [#tpu.dimension_semantics<arbitrary>], iteration_bounds = array<i64: 3>, scalar_prefetch = 0 : i64, scratch_operands = 1 : i64, tpu.core_type = #tpu.core_type<tc>, window_params = [{transform_indices = @transform_0, window_bounds = array<i64: 16, 4>}, {transform_indices = @transform_1, window_bounds = array<i64: 16, 16>}, {pipeline_mode = #tpu.pipeline_mode<synchronous>, transform_indices = @transform_2, window_bounds = array<i64: 16, 32>}, {pipeline_mode = #tpu.pipeline_mode<synchronous>, transform_indices = @transform_3, window_bounds = array<i64: 1, 32>}, {pipeline_mode = #tpu.pipeline_mode<synchronous>, transform_indices = @transform_4, window_bounds = array<i64: 32, 8>}, {pipeline_mode = #tpu.pipeline_mode<synchronous>, transform_indices = @transform_5, window_bounds = array<i64: 1, 8>}, {pipeline_mode = #tpu.pipeline_mode<synchronous>, transform_indices = @transform_6, window_bounds = array<i64: 1, 1>}]} {
    %c0_i32 = arith.constant 0 : i32
    %0 = arith.cmpi eq, %arg0, %c0_i32 : i32
    %1 = arith.extui %0 : i1 to i32
    %c0_i32_0 = arith.constant 0 : i32
    %2 = arith.cmpi ne, %1, %c0_i32_0 : i32
    scf.if %2 {
      %cst_23 = arith.constant 0.000000e+00 : f32
      %50 = vector.broadcast %cst_23 : f32 to vector<1x1xf32>
      %c0_24 = arith.constant 0 : index
      %c0_25 = arith.constant 0 : index
      %51 = vector.load %arg8[%c0_24, %c0_25] : memref<1x1xf32, #tpu.memory_space<vmem>>, vector<1x1xf32>
      tpu.vector_store %arg8[%c0_24, %c0_25], %50 {strides = array<i32>} : memref<1x1xf32, #tpu.memory_space<vmem>>, vector<1x1xf32>,
    } else {
    }
    %c0 = arith.constant 0 : index
    %c0_1 = arith.constant 0 : index
    %3 = vector.load %arg1[%c0, %c0_1] : memref<16x4xf32, #tpu.memory_space<vmem>>, vector<16x4xf32>
    %c0_2 = arith.constant 0 : index
    %c0_3 = arith.constant 0 : index
    %4 = vector.load %arg2[%c0_2, %c0_3] : memref<16x16xf32, #tpu.memory_space<vmem>>, vector<16x16xf32>
    %c0_4 = arith.constant 0 : index
    %c0_5 = arith.constant 0 : index
    %5 = vector.load %arg3[%c0_4, %c0_5] : memref<16x32xf32, #tpu.memory_space<vmem>>, vector<16x32xf32>
    %cst = arith.constant dense<0.000000e+00> : vector<16x32xf32>
    %6 = tpu.matmul %4, %5, %cst {dimension_numbers = #tpu.dot_dimension_numbers<[1], [0], [0], [1], [0, 0, 1, 1], [], []>} : vector<16x16xf32>, vector<16x32xf32>, vector<16x32xf32> -> vector<16x32xf32>
    %c0_6 = arith.constant 0 : index
    %c0_7 = arith.constant 0 : index
    %7 = vector.load %arg4[%c0_6, %c0_7] : memref<1x32xf32, #tpu.memory_space<vmem>>, vector<1x32xf32>
    %8 = vector.broadcast %7 : vector<1x32xf32> to vector<16x32xf32>
    %9 = arith.addf %6, %8 : vector<16x32xf32>
    %10 = math.tanh %9 : vector<16x32xf32>
    %c0_8 = arith.constant 0 : index
    %c0_9 = arith.constant 0 : index
    %11 = vector.load %arg5[%c0_8, %c0_9] : memref<32x8xf32, #tpu.memory_space<vmem>>, vector<32x8xf32>
    %cst_10 = arith.constant dense<0.000000e+00> : vector<16x8xf32>
    %12 = tpu.matmul %10, %11, %cst_10 {dimension_numbers = #tpu.dot_dimension_numbers<[1], [0], [0], [1], [0, 0, 1, 1], [], []>} : vector<16x32xf32>, vector<32x8xf32>, vector<16x8xf32> -> vector<16x8xf32>
    %c0_11 = arith.constant 0 : index
    %c0_12 = arith.constant 0 : index
    %13 = vector.load %arg6[%c0_11, %c0_12] : memref<1x8xf32, #tpu.memory_space<vmem>>, vector<1x8xf32>
    %14 = vector.broadcast %13 : vector<1x8xf32> to vector<16x8xf32>
    %15 = arith.addf %12, %14 : vector<16x8xf32>
    %16 = vector.extract_strided_slice %15 {offsets = [0, 0], sizes = [16, 4], strides = [1, 1]} : vector<16x8xf32> to vector<16x4xf32>
    %17 = vector.extract_strided_slice %15 {offsets = [0, 4], sizes = [16, 4], strides = [1, 1]} : vector<16x8xf32> to vector<16x4xf32>
    %18 = arith.subf %3, %16 : vector<16x4xf32>
    %cst_13 = arith.constant 0.000000e+00 : f32
    %19 = vector.broadcast %cst_13 : f32 to vector<16x4xf32>
    %20 = arith.subf %19, %17 : vector<16x4xf32>
    %21 = math.exp %20 : vector<16x4xf32>
    %22 = arith.mulf %18, %21 : vector<16x4xf32>
    %cst_14 = arith.constant 0.000000e+00 : f32
    %23 = vector.broadcast %cst_14 : f32 to vector<16x4xf32>
    %24 = arith.subf %23, %17 : vector<16x4xf32>
    %25 = arith.mulf %22, %22 : vector<16x4xf32>
    %cst_15 = arith.constant 5.000000e-01 : f32
    %26 = vector.broadcast %cst_15 : f32 to vector<16x4xf32>
    %27 = arith.mulf %26, %25 : vector<16x4xf32>
    %28 = arith.subf %24, %27 : vector<16x4xf32>
    %c16_i32 = arith.constant 16 : i32
    %29 = arith.muli %arg0, %c16_i32 : i32
    %30 = tpu.iota {dimensions = array<i32: 0>} : vector<16x1xi32>
    %31 = vector.broadcast %29 : i32 to vector<16x1xi32>
    %32 = arith.addi %31, %30 : vector<16x1xi32>
    %c40_i32 = arith.constant 40 : i32
    %33 = vector.broadcast %c40_i32 : i32 to vector<16x1xi32>
    %34 = arith.cmpi slt, %32, %33 : vector<16x1xi32>
    %cst_16 = arith.constant 0.000000e+00 : f32
    %35 = vector.shape_cast %34 : vector<16x1xi1> to vector<16x1xi1>
    %36 = vector.broadcast %35 : vector<16x1xi1> to vector<16x4xi1>
    %37 = vector.broadcast %cst_16 : f32 to vector<16x4xf32>
    %38 = arith.select %36, %28, %37 : vector<16x4xi1>, vector<16x4xf32>
    %c0_17 = arith.constant 0 : index
    %c0_18 = arith.constant 0 : index
    %39 = vector.load %arg8[%c0_17, %c0_18] : memref<1x1xf32, #tpu.memory_space<vmem>>, vector<1x1xf32>
    %40 = vector.shape_cast %38 : vector<16x4xf32> to vector<1x16x4xf32>
    %cst_19 = arith.constant dense<0.000000e+00> : vector<1xf32>
    %41 = vector.multi_reduction <add>, %40, %cst_19 [1, 2] : vector<1x16x4xf32> to vector<1xf32>
    %42 = vector.shape_cast %41 : vector<1xf32> to vector<1x1x1xf32>
    %43 = vector.extract %42[0, 0, 0] : f32 from vector<1x1x1xf32>
    %44 = vector.broadcast %43 : f32 to vector<1x1xf32>
    %45 = arith.addf %39, %44 : vector<1x1xf32>
    %c0_20 = arith.constant 0 : index
    %c0_21 = arith.constant 0 : index
    %46 = vector.load %arg8[%c0_20, %c0_21] : memref<1x1xf32, #tpu.memory_space<vmem>>, vector<1x1xf32>
    tpu.vector_store %arg8[%c0_20, %c0_21], %45 {strides = array<i32>} : memref<1x1xf32, #tpu.memory_space<vmem>>, vector<1x1xf32>,
    %c2_i32 = arith.constant 2 : i32
    %47 = arith.cmpi eq, %arg0, %c2_i32 : i32
    %48 = arith.extui %47 : i1 to i32
    %c0_i32_22 = arith.constant 0 : i32
    %49 = arith.cmpi ne, %48, %c0_i32_22 : i32
    scf.if %49 {
      %c0_23 = arith.constant 0 : index
      %c0_24 = arith.constant 0 : index
      %50 = vector.load %arg8[%c0_23, %c0_24] : memref<1x1xf32, #tpu.memory_space<vmem>>, vector<1x1xf32>
      %cst_25 = arith.constant 2.500000e-02 : f32
      %51 = vector.broadcast %cst_25 : f32 to vector<1x1xf32>
      %52 = arith.mulf %50, %51 : vector<1x1xf32>
      %cst_26 = arith.constant 0.000000e+00 : f32
      %53 = vector.broadcast %cst_26 : f32 to vector<1x1xf32>
      %54 = arith.subf %53, %52 : vector<1x1xf32>
      %cst_27 = arith.constant 3.67575407 : f32
      %55 = vector.broadcast %cst_27 : f32 to vector<1x1xf32>
      %56 = arith.addf %54, %55 : vector<1x1xf32>
      %c0_28 = arith.constant 0 : index
      %c0_29 = arith.constant 0 : index
      %57 = vector.load %arg7[%c0_28, %c0_29] : memref<1x1xf32, #tpu.memory_space<vmem>>, vector<1x1xf32>
      tpu.vector_store %arg7[%c0_28, %c0_29], %56 {strides = array<i32>} : memref<1x1xf32, #tpu.memory_space<vmem>>, vector<1x1xf32>,
    } else {
    }
    return
  }
  func.func @transform_0(%arg0: i32) -> (i32, i32) {
    %c0_i32 = arith.constant 0 : i32
    %c0_i32_0 = arith.constant 0 : i32
    return %arg0, %c0_i32 : i32, i32
  }
  func.func @transform_1(%arg0: i32) -> (i32, i32) {
    %c0_i32 = arith.constant 0 : i32
    %c0_i32_0 = arith.constant 0 : i32
    return %arg0, %c0_i32 : i32, i32
  }
  func.func @transform_2(%arg0: i32) -> (i32, i32) {
    %c0_i32 = arith.constant 0 : i32
    %c0_i32_0 = arith.constant 0 : i32
    %c0_i32_1 = arith.constant 0 : i32
    return %c0_i32, %c0_i32_0 : i32, i32
  }
  func.func @transform_3(%arg0: i32) -> (i32, i32) {
    %c0_i32 = arith.constant 0 : i32
    %c0_i32_0 = arith.constant 0 : i32
    %c0_i32_1 = arith.constant 0 : i32
    return %c0_i32, %c0_i32_0 : i32, i32
  }
  func.func @transform_4(%arg0: i32) -> (i32, i32) {
    %c0_i32 = arith.constant 0 : i32
    %c0_i32_0 = arith.constant 0 : i32
    %c0_i32_1 = arith.constant 0 : i32
    return %c0_i32, %c0_i32_0 : i32, i32
  }
  func.func @transform_5(%arg0: i32) -> (i32, i32) {
    %c0_i32 = arith.constant 0 : i32
    %c0_i32_0 = arith.constant 0 : i32
    %c0_i32_1 = arith.constant 0 : i32
    return %c0_i32, %c0_i32_0 : i32, i32
  }
  func.func @transform_6(%arg0: i32) -> (i32, i32) {
    %c0_i32 = arith.constant 0 : i32
    %c0_i32_0 = arith.constant 0 : i32
    %c0_i32_1 = arith.constant 0 : i32
    return %c0_i32, %c0_i32_0 : i32, i32
  }
}

</mosaic_0001>

<bundles_post_ra>
// kernel: tpu_custom_call.1
= control target key start
LH: loop header
LB: loop body
LE: loop exit
PB: predicated region body
PF: predicated region fallthrough
CT: control target
= control target key end

     0   :  { %11 = vsyncpa [#allocation4], 0  ;;  %s750_s21 = smov 0   ;;  %s817_s0 = inlined_call_operand.vmem [shape: f32[48,4], index: 0, kind: input, shape index: {}]   ;;  %s818_s1 = inlined_call_operand.vmem [shape: f32[48,16], index: 1, kind: input, shape index: {}]   ;;  %s819_s2 = inlined_call_operand.vmem [shape: f32[16,32], index: 2, kind: input, shape index: {}]   ;;  %s820_s3 = inlined_call_operand.vmem [shape: f32[1,32], index: 3, kind: input, shape index: {}]   ;;  %s821_s4 = inlined_call_operand.vmem [shape: f32[32,8], index: 4, kind: input, shape index: {}]   ;;  %s822_s5 = inlined_call_operand.vmem [shape: f32[1,8], index: 5, kind: input, shape index: {}]   ;;  %s823_s6 = inlined_call_operand.hbm [shape: f32[1,1], index: 6, kind: output, shape index: {}]  }
   0x1 LB: > { %s756_s22 = sadd.s32 4294967295, %s709_s21   ;;  %p601_p0 = scmp.ge.s32.totalorder %s709_s21, 1  ;;  %s709_s21 = sphi %s750_s21, %s17_s21  }
   0x2   : > { %p220_p1 = scmp.lt.s32.totalorder %s709_s21, 4 }
   0x4   : > { %p221_p2 = pnand %p601_p0, %p220_p1 }
   0x5   : > { %s602_s23 = sshll.u32 (!%p221_p2), %s756_s22, 1  ;;  %p606_p4 = scmp.ne.s32.totalorder (!%p221_p2), %s756_s22, 0 }
   0x6   : > { %224 = sbr.rel (%p221_p2) target bundleno = 1044 (0x414), region = 44  ;;  %p251_p3 = scmp.lt.s32.totalorder (!%p221_p2), %s602_s23, 5 }
   0xb   : > { %s825_s23 = smov (!%p251_p3, %s602_s23), 5  ;;  %265 = sbr.rel (%p606_p4) target bundleno = 18 (0x12), region = 48 }
   0xc   : > { %s603_s24 = sshll.u32 %s825_s23, 3 }
   0xd   : > { %s764_s27 = scalar_lea.vmem %s817_s0, %s603_s24  ;;  %s260_s30 = scalar_lea.vmem %s818_s1, %s603_s24 }
  0x10   : > { %vm266_vm0 = vcmask 0   ;;  %v711_v0 = vmov 0.0  }
  0x11   : > { %267 = vst.msk [vmem:[#allocation2] sm:$0x1] %vm266_vm0, %v711_v0 }
  0x12 PF: > { %v273_v1 = vld [vmem:[%s819_s2 + $0x8] sm:$0xff]  ;;  %v272_v2 = vld [vmem:[%s819_s2] sm:$0xff]  ;;  %vm281_vm1 = vcmask 130048   ;;  %v368_v5 = vld [vmem:[%s821_s4 + $0x18] sm:$0xff]  ;;  %vm376_vm2 = vcmask 261120   ;;  %s712_s25 = smov 124   ;;  %v491_v39 = vlaneseq }
  0x13   : > { %v270_v3 = vld [vmem:[%s260_s30] sm:$0xff]  ;;  %629 = vmatprep.subr.mxu0 %v273_v1  ;;  %v271_v4 = vld [vmem:[%s260_s30 + $0x8] sm:$0xff]  ;;  %v367_v6 = vld [vmem:[%s821_s4 + $0x10] sm:$0xff]  ;;  %636 = vmatprep.subr.mxu1 %v368_v5  ;;  %s713_s26 = smov 4   ;;  %s613_s28 = sshll.u32 %s756_s22, 4  ;;  %vm514_vm5 = vcmask 31744  }
  0x14   : > { %633 = vmatprep.mubr.msk.f32.mxu0 %vm281_vm1, %v270_v3  ;;  %630 = vmatpush3.msra.mxu0 %v273_v1  ;;  %v366_v7 = vld [vmem:[%s821_s4 + $0x8] sm:$0xff]  ;;  %v365_v8 = vld [vmem:[%s821_s4] sm:$0xff]  ;;  %v492_v40 = vshrl.u32 %v491_v39, 7  ;;  %v494_v41 = vstv %s613_s28  ;;  %vm529_vm6 = vcmask 0   ;;  %p614_p5 = scmp.ne.s32.totalorder %s756_s22, 2 }
  0x15   : > { %631 = vmatprep.subr.mxu0 %v272_v2  ;;  %637 = vmatpush3.msra.mxu1 %v368_v5  ;;  %v607_v9 = vld [vmem:[%s820_s3] ss:$0 sm:$0xff]  ;;  %v269_v30 = vld [vmem:[%s764_s27 + $0x8] sm:$0xff] }
  0x16   : > { %632 = vmatpush3.msra.mxu0 %v272_v2  ;;  %638 = vmatprep.subr.mxu1 %v367_v6  ;;  %v610_v16 = vld [vmem:[%s822_s5] ss:$0 sm:$0xff]  ;;  %v495_v42 = vadd.s32 %v494_v41, %v492_v40  ;;  %v493_v43 = vadd.s32 8, %v492_v40 }
  0x17   : > { %634 = vmatmul.mubr.msk.f32.vlgmr.msra.gmra.mxu0 %vm281_vm1, %v271_v4  ;;  %639 = vmatpush3.msra.mxu1 %v367_v6  ;;  %v268_v27 = vld [vmem:[%s764_s27] sm:$0xff] }
  0x18   : > { %640 = vmatprep.subr.mxu1 %v366_v7  ;;  %vm497_vm3 = vcmp.lt.s32.totalorder %v495_v42, 40  ;;  %v496_v45 = vadd.s32 %v494_v41, %v493_v43  ;;  %v505_v63 = vld [vmem:[#allocation2] sm:$0x1] }
  0x19   : > { %641 = vmatpush3.msra.mxu1 %v366_v7 }
  0x1a   : > { %642 = vmatprep.subr.mxu1 %v365_v8  ;;  %vm498_vm4 = vcmp.lt.s32.totalorder %v496_v45, 40 }
  0x1b   : > { %643 = vmatpush3.msra.mxu1 %v365_v8 }
  0xd7   : > { %v635_v10 = vpop.f32.mrf.mxu0 }
  0xd8   : > { %v360_v11 = vadd.f32 %v635_v10, %v607_v9 }
  0xd9   : > { %v354_v12 = vpop.f32.mrf.mxu0 }
  0xda   : > { %v355_v13 = vadd.f32 %v607_v9, %v354_v12 }
  0xdc   : > { %667 = vtanh.f32 %v355_v13 }
  0xdd   : > { %669 = vtanh.f32 %v360_v11 }
  0xe9   : > { %v668_v14 = vpop.eup %667 }
  0xea   : > { %v670_v15 = vpop.eup %669  ;;  %644 = vmatprep.mubr.msk.f32.mxu1 %vm376_vm2, %v668_v14 }
  0xeb   : > { %645 = vmatmul.mubr.msk.f32.vlgmr.msra.gmra.mxu1 %vm376_vm2, %v670_v15 }
 0x1ab   : > { %v646_v17 = vpop.f32.mrf.mxu1 }
 0x1ac   : > { %v455_v18 = vadd.f32 %v646_v17, %v610_v16 }
 0x1ad   : > { %v449_v19 = vpop.f32.mrf.mxu1 }
 0x1ae   : > { %v450_v20 = vadd.f32 %v610_v16, %v449_v19  ;;  %v461_v21 = vsub.f32 0.0, %v455_v18  ;;  %v459_v33 = vsub.f32 %v269_v30, %v455_v18 }
 0x1b0   : > { %v460_v22 = vsub.f32 0.0, %v450_v20  ;;  %v464_v24 = vmul.f32 1.442695, %v461_v21  ;;  %v458_v28 = vsub.f32 %v268_v27, %v450_v20 }
 0x1b2   : > { %v462_v23 = vmul.f32 1.442695, %v460_v22 }
 0x1b4   : > { %671 = vpow2.f32 %v462_v23 }
 0x1b5   : > { %673 = vpow2.f32 %v464_v24 }
 0x1c1   : > { %v672_v25 = vpop.eup %671 }
 0x1c2   : > { %468 = vrot.lane.b32.xlu0 %v672_v25, %s712_s25  ;;  %v674_v26 = vpop.eup %673 }
 0x1c6   : > { %470 = vrot.lane.b32.xlu0 %v674_v26, %s712_s25 }
 0x234   : > { %v469_v29 = vpop.permute.xlu0 %468 }
 0x235   : > { %v474_v31 = vmul.f32 %v469_v29, %v458_v28 }
 0x237   : > { %v476_v32 = vmul.f32 %v474_v31, %v474_v31 }
 0x238   : > { %v471_v34 = vpop.permute.xlu0 %470 }
 0x239   : > { %v475_v35 = vmul.f32 %v471_v34, %v459_v33  ;;  %v478_v36 = vmul.f32 0.5, %v476_v32 }
 0x23b   : > { %v477_v37 = vmul.f32 %v475_v35, %v475_v35  ;;  %482 = vrot.lane.b32.xlu1 %v478_v36, %s713_s26 }
 0x23d   : > { %v479_v38 = vmul.f32 0.5, %v477_v37 }
 0x23f   : > { %484 = vrot.lane.b32.xlu1 %v479_v38, %s713_s26 }
 0x2ad   : > { %v483_v44 = vpop.permute.xlu1 %482 }
 0x2ae   : > { %v488_v46 = vsub.f32 %v460_v22, %v483_v44 }
 0x2b0   : > { %v503_v47 = vsel %vm497_vm3, %v488_v46, 0.0 }
 0x2b1   : > { %508 = vrot.lane.b32.xlu0 %v503_v47, %s712_s25  ;;  %v485_v48 = vpop.permute.xlu1 %484 }
 0x2b2   : > { %v489_v49 = vsub.f32 %v461_v21, %v485_v48 }
 0x2b4   : > { %v504_v50 = vsel %vm498_vm4, %v489_v49, 0.0 }
 0x2b5   : > { %510 = vrot.lane.b32.xlu1 %v504_v50, %s712_s25 }
 0x323   : > { %v509_v51 = vpop.permute.xlu0 %508 }
 0x324   : > { %v515_v53 = vsel %vm514_vm5, %v509_v51, 0.0 }
 0x327   : > { %v511_v52 = vpop.permute.xlu1 %510 }
 0x328   : > { %v516_v54 = vsel %vm514_vm5, %v511_v52, 0.0 }
 0x329   : > { %v517_v55 = vadd.f32 %v516_v54, %v515_v53 }
 0x32b   : > { %518 = vadd.xlane.f32.xlu0 %v517_v55 }
 0x3b4   : > { %v519_v56 = vpop.xlane.xlu0 %518 }
 0x3b5   : > { %v520_v57 = vrot.slane %v519_v56, 4 }
 0x3b7   : > { %v521_v58 = vadd.f32 %v520_v57, %v519_v56 }
 0x3b9   : > { %v522_v59 = vrot.slane %v521_v58, 2 }
 0x3bb   : > { %v523_v60 = vadd.f32 %v522_v59, %v521_v58 }
 0x3bd   : > { %v524_v61 = vrot.slane %v523_v60, 1 }
 0x3bf   : > { %v525_v62 = vadd.f32 %v524_v61, %v523_v60 }
 0x3c1   : > { %647 = vpush %v525_v62 }
 0x3f2   : > { %s648_s27 = spop %647  ;;  %534 = sbr.rel (%p614_p5) target bundleno = 1029 (0x405), region = 52 }
 0x3f3   : > { %v527_v0 = vstv %s648_s27 }
 0x3f4   : > { %v528_v1 = vadd.f32 %v527_v0, %v505_v63 }
 0x3f6   : > { %530 = vst.msk [vmem:[#allocation2] sm:$0x1] %vm529_vm6, %v528_v1 }
 0x3fd   : > { %v535_v2 = vld [vmem:[#allocation2] sm:$0x1] }
 0x3fe   : > { %v536_v3 = vmul.f32 0.025, %v535_v2 }
 0x400   : > { %v537_v4 = vsub.f32 0.0, %v536_v3 }
 0x402   : > { %v538_v5 = vadd.f32 3.675754, %v537_v4 }
 0x404   : > { %539 = vst.msk [vmem:[#allocation3] sm:$0x1] %vm529_vm6, %v538_v5 }
 0x405 PF: > { %p653_p6 = scmp.eq.s32.totalorder %s756_s22, 2  ;;  %s714_s29 = smov [#allocation3]  }
 0x406   : > { %s547_s30 = sshll.u32 %s714_s29, 4  ;;  %s548_s30 = int_to_ptr.vmem [resolvable:$true] %s547_s30 }
 0x407   : > { %s675_s7 = scalar_lea.vmem %s548_s30, 16  ;;  %s681_s8 = scalar_lea.vmem %s548_s30, 32 }
 0x408   : > { %p676_p7 = scmp.ne.s32.totalorder %s548_s30, %s675_s7  ;;  %p682_p10 = scmp.lt.s32.totalorder %s548_s30, %s548_s30 }
 0x409   : > { %p683_p11 = scmp.lt.s32.totalorder %s681_s8, %s675_s7 }
 0x40a   : > { %p677_p8 = pnand %p676_p7, %p653_p6 }
 0x40b   : > { %p684_p12 = por %p683_p11, %p682_p10 }
 0x40c   : > { %p678_p9 = pneg %p677_p8 }
 0x40e   : > { %p685_p13 = pnand %p684_p12, %p678_p9 }
 0x410   : > { %688 = shalt.err (!%p685_p13)
}
 0x411   : > { %650 = dma.vmem_to_hbm [thread:$0]  (%p653_p6), %s548_s30, 16, %s823_s6, [#allocation4]  }
 0x412   : > { %704 = dma.done.wait (%p653_p6), [#allocation4], 16  }
 0x413   : > { %706 = vsyncadd (%p653_p6), [#allocation4], 4294967280 }
 0x414 PF: > { %s17_s21 = sadd.s32 1, %s709_s21  }
 0x415   : > { %p14_p0 = scmp.ge.s32.totalorder %s17_s21, 5  }
 0x417   :  { %16 = sbr.rel (!%p14_p0) target bundleno = 1 (0x1), region = 82 }
 0x41c   :  { %560 = vsyncpa [#allocation4], 1 }
 0x41d   :  { %562 = vsyncpa [#allocation4 + $0x1], 1 }

</bundles_post_ra>
